<compile_context>
chip_gen: v5e
topology: v5e:2x2
jax: 0.10.0
libtpu: 0.0.40
codegen_flags: <defaults>
</compile_context>

<pallas_src>
import jax
import jax.numpy as jnp
from jax.experimental import pallas as pl
from jax.experimental.pallas import tpu as pltpu

BN_EPS = 1e-3  # norm_cfg eps=0.001


# ----------------------------- Pallas kernels ------------------------------

def _deblock_kernel(x_ref, w_ref, shift_ref, o_ref):
    """Fused ConvTranspose2d(k=s, stride=s) + BN + ReLU + pixel shuffle.

    x_ref : (th, W, Cin)            bf16 input rows
    w_ref : (s, Cin, s*Cout)        bf16, BN scale folded, columns = (kw, co)
    shift_ref : (1, s*Cout)         f32 BN shift (tiled over kw)
    o_ref : (th, s, W, s*Cout)      bf16; (H, s, W, s*Cout) row-major order ==
                                    (H*s, W*s, Cout), so the shuffle is free.
    """
    th, w, cin = x_ref.shape
    s = w_ref.shape[0]
    scout = w_ref.shape[2]
    x2d = x_ref[...].reshape(th * w, cin)
    shift = shift_ref[...]
    for sh in range(s):
        y = jnp.dot(x2d, w_ref[sh], preferred_element_type=jnp.float32)
        y = jnp.maximum(y + shift, 0.0)
        o_ref[:, sh, :, :] = y.reshape(th, w, scout).astype(o_ref.dtype)


def _make_head_kernel(level_channels, c0):
    """Fused concat + Conv3x3+BN+ReLU + Conv1x1+BN+ReLU + Conv1x1 + Sigmoid."""
    n_lvl = len(level_channels)
    offs = [0]
    for c in level_channels:
        offs.append(offs[-1] + c)

    def kernel(*args):
        feat_refs = args[:3 * n_lvl]                  # (main, above, below) * L
        w1_refs = args[3 * n_lvl:4 * n_lvl]           # per-level (3,3,C_l,C0)
        b1_ref, w2_ref, b2_ref, w3_ref = args[4 * n_lvl:4 * n_lvl + 4]
        out_ref, mask_ref = args[4 * n_lvl + 4], args[4 * n_lvl + 5]

        th, w0 = mask_ref.shape
        r = pl.program_id(1)
        last = pl.num_programs(1) - 1

        acc = jnp.zeros((th * w0, c0), jnp.float32)
        for lvl in range(n_lvl):
            m_ref = feat_refs[3 * lvl]
            a_ref = feat_refs[3 * lvl + 1]
            b_ref = feat_refs[3 * lvl + 2]
            cl = m_ref.shape[-1]

            main = m_ref[...]                                     # (th, W, cl)
            # The concatenated feature output is just the per-level channel
            # slice of the output block (this IS the concat -- no extra pass).
            out_ref[:, :, offs[lvl]:offs[lvl + 1]] = main.astype(jnp.float32)

            # vertical halo rows; zero them at the image top/bottom borders
            above = a_ref[...]
            below = b_ref[...]
            above = jnp.where(r > 0, above, jnp.zeros_like(above))
            below = jnp.where(r < last, below, jnp.zeros_like(below))

            rows = (jnp.concatenate([above, main[:th - 1]], axis=0),   # i-1
                    main,                                              # i
                    jnp.concatenate([main[1:], below], axis=0))        # i+1

            zcol = jnp.zeros((th, 1, cl), main.dtype)
            w1 = w1_refs[lvl]
            for dy in range(3):
                rs = rows[dy]
                cols = (jnp.concatenate([zcol, rs[:, :w0 - 1, :]], axis=1),  # j-1
                        rs,                                                  # j
                        jnp.concatenate([rs[:, 1:, :], zcol], axis=1))       # j+1
                for dx in range(3):
                    acc = acc + jnp.dot(cols[dx].reshape(th * w0, cl),
                                        w1[dy, dx],
                                        preferred_element_type=jnp.float32)

        h1 = jnp.maximum(acc + b1_ref[...], 0.0)                 # BN + ReLU
        h2 = jnp.dot(h1.astype(jnp.bfloat16), w2_ref[...],
                     preferred_element_type=jnp.float32)
        h2 = jnp.maximum(h2 + b2_ref[...], 0.0)                  # BN + ReLU
        h2 = h2.reshape(th, w0, c0)
        logits = jnp.sum(h2 * w3_ref[...].reshape(1, 1, c0), axis=-1)  # (th, W)
        mask_ref[...] = 1.0 / (1.0 + jnp.exp(-logits))

    return kernel


# ------------------------------ wrappers ------------------------------------

def _pick_rows(h, n_batch, bytes_per_row, budget=8 << 20):
    """Largest divisor of h fitting the VMEM byte budget, preferring >=2 steps."""
    divs = [t for t in range(1, h + 1) if h % t == 0]
    fit = [t for t in divs if t * bytes_per_row <= budget] or [divs[0]]
    multi = [t for t in fit if n_batch * (h // t) >= 2]
    return max(multi if multi else fit)


def deblock_level(x_nhwc, w_eff, shift_eff, s, cout):
    """x_nhwc: (N, H, W, Cin) bf16 -> (N, H*s, W*s, Cout) bf16 (shuffle fused)."""
    n, h, w, cin = x_nhwc.shape
    scout = s * cout
    # double-buffered in+out bytes per input row (bf16)
    bytes_per_row = 2 * (w * cin * 2 + s * s * w * cout * 2)
    th = _pick_rows(h, n, bytes_per_row)
    y5 = pl.pallas_call(
        _deblock_kernel,
        out_shape=jax.ShapeDtypeStruct((n, h, s, w, scout), jnp.bfloat16),
        grid=(n, h // th),
        in_specs=[
            pl.BlockSpec((None, th, w, cin), lambda ni, ri: (ni, ri, 0, 0)),
            pl.BlockSpec((s, cin, scout), lambda ni, ri: (0, 0, 0)),
            pl.BlockSpec((1, scout), lambda ni, ri: (0, 0)),
        ],
        out_specs=pl.BlockSpec((None, th, s, w, scout),
                               lambda ni, ri: (ni, ri, 0, 0, 0)),
        compiler_params=pltpu.CompilerParams(
            dimension_semantics=("parallel", "parallel")),
    )(x_nhwc, w_eff, shift_eff)
    # (N, H, s, W, s*Cout) has the same row-major order as (N, H*s, W*s, Cout)
    return y5.reshape(n, h * s, w * s, cout)


def binary_cls_head(ups, params):
    """ups: list of (N, H0, W0, C_l) bf16 -> (out (N,H0,W0,Csum) f32, mask f32)."""
    n, h0, w0, _ = ups[0].shape
    level_channels = [int(u.shape[-1]) for u in ups]
    csum = sum(level_channels)
    c0 = int(params['w2'].shape[0])
    # row tile: 8 keeps intermediates modest and satisfies the (8,.) mask block
    # constraint; whole-height fallback only for tiny/indivisible H.
    th = 8 if (h0 % 8 == 0 and h0 >= 8) else h0

    in_specs = []
    operands = []
    for u in ups:
        cl = int(u.shape[-1])
        # main rows of the tile
        in_specs.append(pl.BlockSpec((None, th, w0, cl),
                                     lambda ni, ri: (ni, ri, 0, 0)))
        # 1-row halos above / below (clamped; zero-masked at image borders)
        in_specs.append(pl.BlockSpec(
            (None, 1, w0, cl),
            lambda ni, ri: (ni, jnp.maximum(ri * th - 1, 0), 0, 0)))
        in_specs.append(pl.BlockSpec(
            (None, 1, w0, cl),
            lambda ni, ri: (ni, jnp.minimum(ri * th + th, h0 - 1), 0, 0)))
        operands += [u, u, u]
    for w1_l in params['w1']:
        in_specs.append(pl.BlockSpec(w1_l.shape, lambda ni, ri: (0, 0, 0, 0)))
        operands.append(w1_l)
    for p in (params['b1'], params['w2'], params['b2'], params['w3']):
        in_specs.append(pl.BlockSpec(p.shape, lambda ni, ri: (0, 0)))
        operands.append(p)

    kernel = _make_head_kernel(level_channels, c0)
    out, mask = pl.pallas_call(
        kernel,
        out_shape=(jax.ShapeDtypeStruct((n, h0, w0, csum), jnp.float32),
                   jax.ShapeDtypeStruct((n, h0, w0), jnp.float32)),
        grid=(n, h0 // th),
        in_specs=in_specs,
        out_specs=(pl.BlockSpec((None, th, w0, csum),
                                lambda ni, ri: (ni, ri, 0, 0)),
                   pl.BlockSpec((None, th, w0), lambda ni, ri: (ni, ri, 0))),
        compiler_params=pltpu.CompilerParams(
            dimension_semantics=("parallel", "parallel")),
    )(*operands)
    return out, mask


# --------------------------- parameter creation ------------------------------

def _bn_affine(key, c):
    k1, k2, k3, k4 = jax.random.split(key, 4)
    gamma = 1.0 + 0.1 * jax.random.normal(k1, (c,), jnp.float32)
    beta = 0.1 * jax.random.normal(k2, (c,), jnp.float32)
    mean = 0.1 * jax.random.normal(k3, (c,), jnp.float32)
    var = 1.0 + 0.1 * jax.random.uniform(k4, (c,), jnp.float32)
    scale = gamma / jnp.sqrt(var + BN_EPS)
    shift = beta - mean * scale
    return scale, shift


def make_params(key, in_channels, out_channels, upsample_strides):
    params = {'deblocks': []}
    keys = jax.random.split(key, len(in_channels) + 1)
    for i, (cin, cout, s) in enumerate(
            zip(in_channels, out_channels, upsample_strides)):
        kw, kb = jax.random.split(keys[i])
        # torch ConvTranspose2d weight: (Cin, Cout, kH=s, kW=s), bias=False
        w = 0.1 * jax.random.normal(kw, (cin, cout, s, s), jnp.float32)
        scale, shift = _bn_affine(kb, cout)
        # (kh, Cin, kw, Cout), fold BN scale, flatten to (s, Cin, s*Cout)
        w_eff = jnp.transpose(w, (2, 0, 3, 1)) * scale[None, None, None, :]
        w_eff = w_eff.reshape(s, cin, s * cout).astype(jnp.bfloat16)
        shift_eff = jnp.tile(shift, s).reshape(1, s * cout)  # f32, (kw, co)
        params['deblocks'].append((w_eff, shift_eff, cout, s))

    csum = sum(out_channels)
    c0 = out_channels[0]
    k1, k2, k3, k4, k5 = jax.random.split(keys[-1], 5)
    # binary_cls conv1: torch (C0, Csum, 3, 3) -> HWIO, BN scale folded,
    # split per level along the input-channel dim (conv(concat) == sum of convs)
    w1 = 0.1 * jax.random.normal(k1, (c0, csum, 3, 3), jnp.float32)
    s1, b1 = _bn_affine(k2, c0)
    w1_hwio = (jnp.transpose(w1, (2, 3, 1, 0))
               * s1[None, None, None, :]).astype(jnp.bfloat16)
    offs = [0]
    for c in out_channels:
        offs.append(offs[-1] + c)
    params['w1'] = [w1_hwio[:, :, offs[l]:offs[l + 1], :]
                    for l in range(len(out_channels))]
    params['b1'] = b1.reshape(1, -1)                                   # f32
    # binary_cls conv2: (C0, C0, 1, 1) -> (Cin, Cout), BN scale folded
    w2 = 0.1 * jax.random.normal(k3, (c0, c0, 1, 1), jnp.float32)
    s2, b2 = _bn_affine(k4, c0)
    params['w2'] = (jnp.transpose(w2[:, :, 0, 0], (1, 0))
                    * s2[None, :]).astype(jnp.bfloat16)
    params['b2'] = b2.reshape(1, -1)                                   # f32
    # binary_cls conv3: (1, C0, 1, 1) -> row vector (1, C0), no BN / bias after
    w3 = 0.1 * jax.random.normal(k5, (1, c0, 1, 1), jnp.float32)
    params['w3'] = w3[:, :, 0, 0]                                      # f32
    return params


# ------------------------------ forward pass ---------------------------------

def second_fpn_mask_forward(xs, params):
    """xs: list of NCHW float32 arrays, one per pyramid level."""
    ups = []
    for x, (w_eff, shift_eff, cout, s) in zip(xs, params['deblocks']):
        xh = jnp.transpose(x, (0, 2, 3, 1)).astype(jnp.bfloat16)  # NHWC bf16
        ups.append(deblock_level(xh, w_eff, shift_eff, s, cout))

    # fused concat + binary_cls head (one kernel): out (f32) and mask (f32)
    out, mask = binary_cls_head(ups, params)

    out_nchw = jnp.transpose(out, (0, 3, 1, 2))
    mask_nchw = mask[:, None, :, :]
    # matches `return tuple([[out], [mask]])`
    return tuple([[out_nchw], [mask_nchw]])


# ---------------------------------- main --------------------------------------

if __name__ == "__main__":
    # small config consistent with the module (3 levels, strides 1/2/4)
    in_channels = [4, 4, 8]
    out_channels = [8, 8, 8]
    upsample_strides = [1, 2, 4]
    N, H, W = 2, 16, 16

    key = jax.random.PRNGKey(0)
    k0, k1, k2, kp = jax.random.split(key, 4)
    xs = [
        jax.random.normal(k0, (N, in_channels[0], H, W), jnp.float32),
        jax.random.normal(k1, (N, in_channels[1], H // 2, W // 2), jnp.float32),
        jax.random.normal(k2, (N, in_channels[2], H // 4, W // 4), jnp.float32),
    ]
    params = make_params(kp, in_channels, out_channels, upsample_strides)

    (out_list, mask_list) = second_fpn_mask_forward(xs, params)
    out = jax.block_until_ready(out_list[0])
    mask = jax.block_until_ready(mask_list[0])

    assert out.shape == (N, sum(out_channels), H, W)
    assert mask.shape == (N, 1, H, W)
    assert bool(jnp.all(jnp.isfinite(out))) and bool(jnp.all(jnp.isfinite(mask)))
    assert bool(jnp.all(mask >= 0.0)) and bool(jnp.all(mask <= 1.0))
    # TODO(synk): focal_loss() is a training-time loss, not part of forward; not implemented.
    print("KERNEL_OK")
</pallas_src>

<mosaic_0001>
module attributes {stable_mosaic.version = 11 : i64} {
  func.func @_deblock_kernel(%arg0: i32, %arg1: i32, %arg2: memref<1x16x16x4xbf16, #tpu.memory_space<vmem>>, %arg3: memref<1x4x8xbf16, #tpu.memory_space<vmem>>, %arg4: memref<1x8xf32, #tpu.memory_space<vmem>>, %arg5: memref<1x16x1x16x8xbf16, #tpu.memory_space<vmem>>) attributes {dimension_semantics = [#tpu.dimension_semantics<parallel>, #tpu.dimension_semantics<parallel>], iteration_bounds = array<i64: 2, 1>, scalar_prefetch = 0 : i64, scratch_operands = 0 : i64, tpu.core_type = #tpu.core_type<tc>, window_params = [{transform_indices = @transform_0, window_bounds = array<i64: 1, 16, 16, 4>}, {pipeline_mode = #tpu.pipeline_mode<synchronous>, transform_indices = @transform_1, window_bounds = array<i64: 1, 4, 8>}, {pipeline_mode = #tpu.pipeline_mode<synchronous>, transform_indices = @transform_2, window_bounds = array<i64: 1, 8>}, {transform_indices = @transform_3, window_bounds = array<i64: 1, 16, 1, 16, 8>}]} {
    %c0 = arith.constant 0 : index
    %c0_0 = arith.constant 0 : index
    %c0_1 = arith.constant 0 : index
    %c0_2 = arith.constant 0 : index
    %0 = vector.load %arg2[%c0, %c0_0, %c0_1, %c0_2] : memref<1x16x16x4xbf16, #tpu.memory_space<vmem>>, vector<1x16x16x4xbf16>
    %1 = vector.shape_cast %0 : vector<1x16x16x4xbf16> to vector<16x16x4xbf16>
    %2 = vector.shape_cast %1 : vector<16x16x4xbf16> to vector<256x4xbf16>
    %c0_3 = arith.constant 0 : index
    %c0_4 = arith.constant 0 : index
    %3 = vector.load %arg4[%c0_3, %c0_4] : memref<1x8xf32, #tpu.memory_space<vmem>>, vector<1x8xf32>
    %c0_5 = arith.constant 0 : index
    %c0_6 = arith.constant 0 : index
    %c0_7 = arith.constant 0 : index
    %4 = vector.load %arg3[%c0_5, %c0_6, %c0_7] : memref<1x4x8xbf16, #tpu.memory_space<vmem>>, vector<1x4x8xbf16>
    %5 = vector.shape_cast %4 : vector<1x4x8xbf16> to vector<4x8xbf16>
    %cst = arith.constant dense<0.000000e+00> : vector<256x8xf32>
    %6 = tpu.matmul %2, %5, %cst {dimension_numbers = #tpu.dot_dimension_numbers<[1], [0], [0], [1], [0, 0, 1, 1], [], []>} : vector<256x4xbf16>, vector<4x8xbf16>, vector<256x8xf32> -> vector<256x8xf32>
    %7 = vector.broadcast %3 : vector<1x8xf32> to vector<256x8xf32>
    %8 = arith.addf %6, %7 : vector<256x8xf32>
    %cst_8 = arith.constant 0.000000e+00 : f32
    %9 = vector.broadcast %cst_8 : f32 to vector<256x8xf32>
    %10 = arith.maximumf %8, %9 : vector<256x8xf32>
    %11 = vector.shape_cast %10 : vector<256x8xf32> to vector<16x16x8xf32>
    %12 = arith.truncf %11 : vector<16x16x8xf32> to vector<16x16x8xbf16>
    %c0_9 = arith.constant 0 : index
    %c0_10 = arith.constant 0 : index
    %c0_11 = arith.constant 0 : index
    %c0_12 = arith.constant 0 : index
    %c0_13 = arith.constant 0 : index
    %13 = vector.load %arg5[%c0_9, %c0_10, %c0_11, %c0_12, %c0_13] : memref<1x16x1x16x8xbf16, #tpu.memory_space<vmem>>, vector<1x16x1x16x8xbf16>
    %14 = vector.shape_cast %13 : vector<1x16x1x16x8xbf16> to vector<16x16x8xbf16>
    %15 = vector.shape_cast %12 : vector<16x16x8xbf16> to vector<1x16x1x16x8xbf16>
    tpu.vector_store %arg5[%c0_9, %c0_10, %c0_11, %c0_12, %c0_13], %15 {strides = array<i32>} : memref<1x16x1x16x8xbf16, #tpu.memory_space<vmem>>, vector<1x16x1x16x8xbf16>,
    return
  }
  func.func @transform_0(%arg0: i32, %arg1: i32) -> (i32, i32, i32, i32) {
    %c0_i32 = arith.constant 0 : i32
    %c0_i32_0 = arith.constant 0 : i32
    %c0_i32_1 = arith.constant 0 : i32
    return %arg0, %arg1, %c0_i32, %c0_i32_0 : i32, i32, i32, i32
  }
  func.func @transform_1(%arg0: i32, %arg1: i32) -> (i32, i32, i32) {
    %c0_i32 = arith.constant 0 : i32
    %c0_i32_0 = arith.constant 0 : i32
    %c0_i32_1 = arith.constant 0 : i32
    %c0_i32_2 = arith.constant 0 : i32
    return %c0_i32, %c0_i32_0, %c0_i32_1 : i32, i32, i32
  }
  func.func @transform_2(%arg0: i32, %arg1: i32) -> (i32, i32) {
    %c0_i32 = arith.constant 0 : i32
    %c0_i32_0 = arith.constant 0 : i32
    %c0_i32_1 = arith.constant 0 : i32
    return %c0_i32, %c0_i32_0 : i32, i32
  }
  func.func @transform_3(%arg0: i32, %arg1: i32) -> (i32, i32, i32, i32, i32) {
    %c0_i32 = arith.constant 0 : i32
    %c0_i32_0 = arith.constant 0 : i32
    %c0_i32_1 = arith.constant 0 : i32
    %c0_i32_2 = arith.constant 0 : i32
    return %arg0, %arg1, %c0_i32, %c0_i32_0, %c0_i32_1 : i32, i32, i32, i32, i32
  }
}

</mosaic_0001>

<bundles_post_ra>
// kernel: tpu_custom_call.1
= control target key start
LH: loop header
LB: loop body
LE: loop exit
PB: predicated region body
PF: predicated region fallthrough
CT: control target
= control target key end

     0   :  { %s849_s12 = smov 0   ;;  %s851_s13 = smov 0   ;;  %s1011_s0 = inlined_call_operand.vmem [shape: bf16[2,16,16,4], index: 0, kind: input, shape index: {}]   ;;  %s1012_s1 = inlined_call_operand.vmem [shape: bf16[1,4,8], index: 1, kind: input, shape index: {}]   ;;  %s1013_s2 = inlined_call_operand.vmem [shape: f32[1,8], index: 2, kind: input, shape index: {}]   ;;  %s1014_s3 = inlined_call_operand.vmem [shape: bf16[2,16,1,16,8], index: 3, kind: output, shape index: {}]  }
   0x1   :  { %s853_s14 = smov 0  }
   0x2 LB: > { %s25_s15 = sadd.s32 1, %s823_s13  ;;  %p672_p0 = scmp.ge.s32.totalorder %s827_s14, 1  ;;  %s827_s14 = sphi %s853_s14, %s13_s14   ;;  %s823_s13 = sphi %s851_s13, %s1016_s13   ;;  %s819_s12 = sphi %s849_s12, %s1015_s12  }
   0x3   : > { %p27_p1 = scmp.ge.s32.totalorder %s25_s15, 2  ;;  %p159_p2 = scmp.lt.s32.totalorder %s827_s14, 3 }
   0x5   : > { %s1018_s15 = smov (%p27_p1, %s25_s15), 0  ;;  %p160_p3 = pnand %p672_p0, %p159_p2 }
   0x6   : > { %p194_p4 = scmp.lt.s32.totalorder (!%p160_p3), %s819_s12, 1 }
   0x7   : > { %163 = sbr.rel (%p160_p3) target bundleno = 214 (0xd6), region = 32 }
   0xc   : > { %v249_v0 = vld [vmem:[%s1012_s1] sm:$0x3]  ;;  %vm382_vm0 = vcmask 1041408   ;;  %s1020_s12 = smov (!%p194_p4, %s819_s12), 1  ;;  %vm333_vm1 = vcmask 31744   ;;  %vm539_vm2 = vcmask 60416  }
   0xd   : > { %v384_v1 = vsel %vm382_vm0, %v249_v0, 0  ;;  %s759_s18 = sshll.u32 %s1020_s12, 7  ;;  %v897_v18 = vld [vmem:[%s1013_s2] ss:$0 sm:$0xff] }
   0xe   : > { %393 = vmatpush.bf16.msra.mxu0 %v384_v1  ;;  %777 = vmatpush.bf16.msra.mxu1 %v384_v1  ;;  %s202_s21 = scalar_lea.vmem %s1011_s0, %s759_s18  ;;  %s906_s26 = scalar_lea.vmem %s1014_s3, %s759_s18 }
   0xf   : > { %778 = vmatpush.bf16.msra.mxu2 %v384_v1  ;;  %779 = vmatpush.bf16.msra.mxu3 %v384_v1  ;;  %v761_v2 = vld [vmem:[%s202_s21] sm:$0xff]  ;;  %v762_v6 = vld [vmem:[%s202_s21 + $0x8] sm:$0xff]  ;;  %v763_v10 = vld [vmem:[%s202_s21 + $0x10] sm:$0xff] }
  0x10   : > { %v765_v3 = vld [vmem:[%s202_s21 + $0x20] sm:$0xff]  ;;  %v766_v7 = vld [vmem:[%s202_s21 + $0x28] sm:$0xff]  ;;  %v767_v11 = vld [vmem:[%s202_s21 + $0x30] sm:$0xff] }
  0x11   : > { %v769_v4 = vld [vmem:[%s202_s21 + $0x40] sm:$0xff]  ;;  %741 = vmatmul.msk.bf16.vlgmr.msra.gmra.mxu0 %vm333_vm1, %v761_v2  ;;  %745 = vmatmul.msk.bf16.vlgmr.msra.gmra.mxu1 %vm333_vm1, %v765_v3  ;;  %v770_v8 = vld [vmem:[%s202_s21 + $0x48] sm:$0xff]  ;;  %v771_v12 = vld [vmem:[%s202_s21 + $0x50] sm:$0xff] }
  0x12   : > { %v773_v5 = vld [vmem:[%s202_s21 + $0x60] sm:$0xff]  ;;  %749 = vmatmul.msk.bf16.vlgmr.msra.gmra.mxu2 %vm333_vm1, %v769_v4  ;;  %v774_v9 = vld [vmem:[%s202_s21 + $0x68] sm:$0xff]  ;;  %v775_v13 = vld [vmem:[%s202_s21 + $0x70] sm:$0xff] }
  0x13   : > { %753 = vmatmul.msk.bf16.vlgmr.msra.gmra.mxu3 %vm333_vm1, %v773_v5  ;;  %v764_v14 = vld [vmem:[%s202_s21 + $0x18] sm:$0xff] }
  0x14   : > { %v768_v15 = vld [vmem:[%s202_s21 + $0x38] sm:$0xff] }
  0x15   : > { %v772_v16 = vld [vmem:[%s202_s21 + $0x58] sm:$0xff] }
  0x16   : > { %v776_v17 = vld [vmem:[%s202_s21 + $0x78] sm:$0xff] }
  0x21   : > { %742 = vmatmul.msk.bf16.gmra.mxu0 %vm333_vm1, %v762_v6  ;;  %746 = vmatmul.msk.bf16.gmra.mxu1 %vm333_vm1, %v766_v7 }
  0x22   : > { %750 = vmatmul.msk.bf16.gmra.mxu2 %vm333_vm1, %v770_v8 }
  0x23   : > { %754 = vmatmul.msk.bf16.gmra.mxu3 %vm333_vm1, %v774_v9 }
  0x31   : > { %743 = vmatmul.msk.bf16.gmra.mxu0 %vm333_vm1, %v763_v10  ;;  %747 = vmatmul.msk.bf16.gmra.mxu1 %vm333_vm1, %v767_v11 }
  0x32   : > { %751 = vmatmul.msk.bf16.gmra.mxu2 %vm333_vm1, %v771_v12 }
  0x33   : > { %755 = vmatmul.msk.bf16.gmra.mxu3 %vm333_vm1, %v775_v13 }
  0x41   : > { %744 = vmatmul.msk.bf16.gmra.mxu0 %vm333_vm1, %v764_v14  ;;  %748 = vmatmul.msk.bf16.gmra.mxu1 %vm333_vm1, %v768_v15 }
  0x42   : > { %752 = vmatmul.msk.bf16.gmra.mxu2 %vm333_vm1, %v772_v16 }
  0x43   : > { %756 = vmatmul.msk.bf16.gmra.mxu3 %vm333_vm1, %v776_v17 }
  0x8e   : > { %v395_v19 = vpop.f32.mrf.mxu0  ;;  %v415_v20 = vpop.f32.mrf.mxu1 }
  0x8f   : > { %v396_v21 = vadd.f32 %v897_v18, %v395_v19  ;;  %v416_v22 = vadd.f32 %v897_v18, %v415_v20 }
  0x91   : > { %v475_v23 = vmax.f32 %v396_v21, 0.0  ;;  %v483_v24 = vmax.f32 %v416_v22, 0.0 }
  0x93   : > { %v507_v25 = vpack.c.bf16 %v475_v23, %v475_v23  ;;  %v515_v26 = vpack.c.bf16 %v483_v24, %v483_v24 }
  0x95   : > { %540 = vst.msk [vmem:[%s906_s26] sm:$0xf] %vm539_vm2, %v507_v25  ;;  %v435_v27 = vpop.f32.mrf.mxu2 }
  0x96   : > { %v455_v28 = vpop.f32.mrf.mxu3  ;;  %548 = vst.msk [vmem:[%s906_s26 + $0x20] sm:$0xf] %vm539_vm2, %v515_v26  ;;  %v436_v29 = vadd.f32 %v897_v18, %v435_v27  ;;  %v397_v31 = vpop.f32.mrf.mxu0 }
  0x97   : > { %v456_v30 = vadd.f32 %v897_v18, %v455_v28  ;;  %v417_v32 = vpop.f32.mrf.mxu1  ;;  %v398_v33 = vadd.f32 %v897_v18, %v397_v31 }
  0x98   : > { %v418_v34 = vadd.f32 %v897_v18, %v417_v32  ;;  %v491_v35 = vmax.f32 %v436_v29, 0.0 }
  0x99   : > { %v499_v36 = vmax.f32 %v456_v30, 0.0  ;;  %v476_v37 = vmax.f32 %v398_v33, 0.0 }
  0x9a   : > { %v484_v38 = vmax.f32 %v418_v34, 0.0  ;;  %v523_v39 = vpack.c.bf16 %v491_v35, %v491_v35 }
  0x9b   : > { %v531_v40 = vpack.c.bf16 %v499_v36, %v499_v36  ;;  %v508_v41 = vpack.c.bf16 %v476_v37, %v476_v37 }
  0x9c   : > { %v516_v42 = vpack.c.bf16 %v484_v38, %v484_v38  ;;  %556 = vst.msk [vmem:[%s906_s26 + $0x40] sm:$0xf] %vm539_vm2, %v523_v39 }
  0x9d   : > { %564 = vst.msk [vmem:[%s906_s26 + $0x60] sm:$0xf] %vm539_vm2, %v531_v40  ;;  %v437_v43 = vpop.f32.mrf.mxu2 }
  0x9e   : > { %v457_v44 = vpop.f32.mrf.mxu3  ;;  %541 = vst.msk [vmem:[%s906_s26 + $0x4] sm:$0xf] %vm539_vm2, %v508_v41  ;;  %v438_v45 = vadd.f32 %v897_v18, %v437_v43  ;;  %v400_v47 = vpop.f32.mrf.mxu0 }
  0x9f   : > { %v458_v46 = vadd.f32 %v897_v18, %v457_v44  ;;  %v420_v48 = vpop.f32.mrf.mxu1  ;;  %549 = vst.msk [vmem:[%s906_s26 + $0x24] sm:$0xf] %vm539_vm2, %v516_v42  ;;  %v401_v49 = vadd.f32 %v897_v18, %v400_v47 }
  0xa0   : > { %v421_v50 = vadd.f32 %v897_v18, %v420_v48  ;;  %v492_v51 = vmax.f32 %v438_v45, 0.0 }
  0xa1   : > { %v500_v52 = vmax.f32 %v458_v46, 0.0  ;;  %v477_v53 = vmax.f32 %v401_v49, 0.0 }
  0xa2   : > { %v485_v54 = vmax.f32 %v421_v50, 0.0  ;;  %v524_v55 = vpack.c.bf16 %v492_v51, %v492_v51 }
  0xa3   : > { %v532_v56 = vpack.c.bf16 %v500_v52, %v500_v52  ;;  %v509_v57 = vpack.c.bf16 %v477_v53, %v477_v53 }
  0xa4   : > { %v517_v58 = vpack.c.bf16 %v485_v54, %v485_v54  ;;  %557 = vst.msk [vmem:[%s906_s26 + $0x44] sm:$0xf] %vm539_vm2, %v524_v55 }
  0xa5   : > { %565 = vst.msk [vmem:[%s906_s26 + $0x64] sm:$0xf] %vm539_vm2, %v532_v56  ;;  %v440_v59 = vpop.f32.mrf.mxu2 }
  0xa6   : > { %v460_v60 = vpop.f32.mrf.mxu3  ;;  %542 = vst.msk [vmem:[%s906_s26 + $0x8] sm:$0xf] %vm539_vm2, %v509_v57  ;;  %v441_v61 = vadd.f32 %v897_v18, %v440_v59  ;;  %v402_v63 = vpop.f32.mrf.mxu0 }
  0xa7   : > { %v461_v62 = vadd.f32 %v897_v18, %v460_v60  ;;  %v422_v0 = vpop.f32.mrf.mxu1  ;;  %550 = vst.msk [vmem:[%s906_s26 + $0x28] sm:$0xf] %vm539_vm2, %v517_v58  ;;  %v403_v1 = vadd.f32 %v897_v18, %v402_v63 }
  0xa8   : > { %v423_v2 = vadd.f32 %v897_v18, %v422_v0  ;;  %v493_v3 = vmax.f32 %v441_v61, 0.0 }
  0xa9   : > { %v501_v4 = vmax.f32 %v461_v62, 0.0  ;;  %v478_v5 = vmax.f32 %v403_v1, 0.0 }
  0xaa   : > { %v486_v6 = vmax.f32 %v423_v2, 0.0  ;;  %v525_v7 = vpack.c.bf16 %v493_v3, %v493_v3 }
  0xab   : > { %v533_v8 = vpack.c.bf16 %v501_v4, %v501_v4  ;;  %v510_v9 = vpack.c.bf16 %v478_v5, %v478_v5 }
  0xac   : > { %v518_v10 = vpack.c.bf16 %v486_v6, %v486_v6  ;;  %558 = vst.msk [vmem:[%s906_s26 + $0x48] sm:$0xf] %vm539_vm2, %v525_v7 }
  0xad   : > { %566 = vst.msk [vmem:[%s906_s26 + $0x68] sm:$0xf] %vm539_vm2, %v533_v8  ;;  %v442_v11 = vpop.f32.mrf.mxu2 }
  0xae   : > { %v462_v12 = vpop.f32.mrf.mxu3  ;;  %543 = vst.msk [vmem:[%s906_s26 + $0xc] sm:$0xf] %vm539_vm2, %v510_v9  ;;  %v443_v13 = vadd.f32 %v897_v18, %v442_v11  ;;  %v405_v15 = vpop.f32.mrf.mxu0 }
  0xaf   : > { %v463_v14 = vadd.f32 %v897_v18, %v462_v12  ;;  %v425_v16 = vpop.f32.mrf.mxu1  ;;  %551 = vst.msk [vmem:[%s906_s26 + $0x2c] sm:$0xf] %vm539_vm2, %v518_v10  ;;  %v406_v17 = vadd.f32 %v897_v18, %v405_v15 }
  0xb0   : > { %v426_v19 = vadd.f32 %v897_v18, %v425_v16  ;;  %v494_v20 = vmax.f32 %v443_v13, 0.0 }
  0xb1   : > { %v502_v21 = vmax.f32 %v463_v14, 0.0  ;;  %v479_v22 = vmax.f32 %v406_v17, 0.0 }
  0xb2   : > { %v487_v23 = vmax.f32 %v426_v19, 0.0  ;;  %v526_v24 = vpack.c.bf16 %v494_v20, %v494_v20 }
  0xb3   : > { %v534_v25 = vpack.c.bf16 %v502_v21, %v502_v21  ;;  %v511_v26 = vpack.c.bf16 %v479_v22, %v479_v22 }
  0xb4   : > { %v519_v27 = vpack.c.bf16 %v487_v23, %v487_v23  ;;  %559 = vst.msk [vmem:[%s906_s26 + $0x4c] sm:$0xf] %vm539_vm2, %v526_v24 }
  0xb5   : > { %567 = vst.msk [vmem:[%s906_s26 + $0x6c] sm:$0xf] %vm539_vm2, %v534_v25  ;;  %v445_v28 = vpop.f32.mrf.mxu2 }
  0xb6   : > { %v465_v29 = vpop.f32.mrf.mxu3  ;;  %544 = vst.msk [vmem:[%s906_s26 + $0x10] sm:$0xf] %vm539_vm2, %v511_v26  ;;  %v446_v30 = vadd.f32 %v897_v18, %v445_v28  ;;  %v407_v32 = vpop.f32.mrf.mxu0 }
  0xb7   : > { %v466_v31 = vadd.f32 %v897_v18, %v465_v29  ;;  %v427_v33 = vpop.f32.mrf.mxu1  ;;  %552 = vst.msk [vmem:[%s906_s26 + $0x30] sm:$0xf] %vm539_vm2, %v519_v27  ;;  %v408_v34 = vadd.f32 %v897_v18, %v407_v32 }
  0xb8   : > { %v428_v35 = vadd.f32 %v897_v18, %v427_v33  ;;  %v495_v36 = vmax.f32 %v446_v30, 0.0 }
  0xb9   : > { %v503_v37 = vmax.f32 %v466_v31, 0.0  ;;  %v480_v38 = vmax.f32 %v408_v34, 0.0 }
  0xba   : > { %v488_v39 = vmax.f32 %v428_v35, 0.0  ;;  %v527_v40 = vpack.c.bf16 %v495_v36, %v495_v36 }
  0xbb   : > { %v535_v41 = vpack.c.bf16 %v503_v37, %v503_v37  ;;  %v512_v42 = vpack.c.bf16 %v480_v38, %v480_v38 }
  0xbc   : > { %v520_v43 = vpack.c.bf16 %v488_v39, %v488_v39  ;;  %560 = vst.msk [vmem:[%s906_s26 + $0x50] sm:$0xf] %vm539_vm2, %v527_v40 }
  0xbd   : > { %568 = vst.msk [vmem:[%s906_s26 + $0x70] sm:$0xf] %vm539_vm2, %v535_v41  ;;  %v447_v44 = vpop.f32.mrf.mxu2 }
  0xbe   : > { %v467_v45 = vpop.f32.mrf.mxu3  ;;  %545 = vst.msk [vmem:[%s906_s26 + $0x14] sm:$0xf] %vm539_vm2, %v512_v42  ;;  %v448_v46 = vadd.f32 %v897_v18, %v447_v44  ;;  %v410_v48 = vpop.f32.mrf.mxu0 }
  0xbf   : > { %v468_v47 = vadd.f32 %v897_v18, %v467_v45  ;;  %v430_v49 = vpop.f32.mrf.mxu1  ;;  %553 = vst.msk [vmem:[%s906_s26 + $0x34] sm:$0xf] %vm539_vm2, %v520_v43  ;;  %v411_v50 = vadd.f32 %v897_v18, %v410_v48 }
  0xc0   : > { %v431_v51 = vadd.f32 %v897_v18, %v430_v49  ;;  %v496_v52 = vmax.f32 %v448_v46, 0.0 }
  0xc1   : > { %v504_v53 = vmax.f32 %v468_v47, 0.0  ;;  %v481_v54 = vmax.f32 %v411_v50, 0.0 }
  0xc2   : > { %v489_v55 = vmax.f32 %v431_v51, 0.0  ;;  %v528_v56 = vpack.c.bf16 %v496_v52, %v496_v52 }
  0xc3   : > { %v536_v57 = vpack.c.bf16 %v504_v53, %v504_v53  ;;  %v513_v58 = vpack.c.bf16 %v481_v54, %v481_v54 }
  0xc4   : > { %v521_v59 = vpack.c.bf16 %v489_v55, %v489_v55  ;;  %561 = vst.msk [vmem:[%s906_s26 + $0x54] sm:$0xf] %vm539_vm2, %v528_v56 }
  0xc5   : > { %569 = vst.msk [vmem:[%s906_s26 + $0x74] sm:$0xf] %vm539_vm2, %v536_v57  ;;  %v450_v60 = vpop.f32.mrf.mxu2 }
  0xc6   : > { %v470_v61 = vpop.f32.mrf.mxu3  ;;  %546 = vst.msk [vmem:[%s906_s26 + $0x18] sm:$0xf] %vm539_vm2, %v513_v58  ;;  %v451_v62 = vadd.f32 %v897_v18, %v450_v60  ;;  %v412_v0 = vpop.f32.mrf.mxu0 }
  0xc7   : > { %v471_v63 = vadd.f32 %v897_v18, %v470_v61  ;;  %v432_v1 = vpop.f32.mrf.mxu1  ;;  %554 = vst.msk [vmem:[%s906_s26 + $0x38] sm:$0xf] %vm539_vm2, %v521_v59  ;;  %v413_v2 = vadd.f32 %v897_v18, %v412_v0 }
  0xc8   : > { %v433_v3 = vadd.f32 %v897_v18, %v432_v1  ;;  %v497_v4 = vmax.f32 %v451_v62, 0.0 }
  0xc9   : > { %v505_v5 = vmax.f32 %v471_v63, 0.0  ;;  %v482_v6 = vmax.f32 %v413_v2, 0.0 }
  0xca   : > { %v490_v7 = vmax.f32 %v433_v3, 0.0  ;;  %v529_v8 = vpack.c.bf16 %v497_v4, %v497_v4 }
  0xcb   : > { %v537_v9 = vpack.c.bf16 %v505_v5, %v505_v5  ;;  %v514_v10 = vpack.c.bf16 %v482_v6, %v482_v6 }
  0xcc   : > { %v522_v11 = vpack.c.bf16 %v490_v7, %v490_v7  ;;  %562 = vst.msk [vmem:[%s906_s26 + $0x58] sm:$0xf] %vm539_vm2, %v529_v8 }
  0xcd   : > { %570 = vst.msk [vmem:[%s906_s26 + $0x78] sm:$0xf] %vm539_vm2, %v537_v9  ;;  %v452_v12 = vpop.f32.mrf.mxu2 }
  0xce   : > { %v472_v13 = vpop.f32.mrf.mxu3  ;;  %547 = vst.msk [vmem:[%s906_s26 + $0x1c] sm:$0xf] %vm539_vm2, %v514_v10  ;;  %v453_v14 = vadd.f32 %v897_v18, %v452_v12 }
  0xcf   : > { %v473_v15 = vadd.f32 %v897_v18, %v472_v13  ;;  %555 = vst.msk [vmem:[%s906_s26 + $0x3c] sm:$0xf] %vm539_vm2, %v522_v11 }
  0xd0   : > { %v498_v16 = vmax.f32 %v453_v14, 0.0 }
  0xd1   : > { %v506_v17 = vmax.f32 %v473_v15, 0.0 }
  0xd2   : > { %v530_v19 = vpack.c.bf16 %v498_v16, %v498_v16 }
  0xd3   : > { %v538_v20 = vpack.c.bf16 %v506_v17, %v506_v17 }
  0xd4   : > { %563 = vst.msk [vmem:[%s906_s26 + $0x5c] sm:$0xf] %vm539_vm2, %v530_v19 }
  0xd5   : > { %571 = vst.msk [vmem:[%s906_s26 + $0x7c] sm:$0xf] %vm539_vm2, %v538_v20 }
  0xd6 PF: > { %s13_s14 = sadd.s32 1, %s827_s14   ;;  %s1015_s12 = smov %s823_s13 }
  0xd7   : > { %p10_p5 = scmp.ge.s32.totalorder %s13_s14, 4   ;;  %s1016_s13 = smov %s1018_s15 }
  0xd9   :  { %12 = sbr.rel (!%p10_p5) target bundleno = 2 (0x2), region = 62 }

</bundles_post_ra>
